<compile_context>
chip_gen: v5e
topology: v5e:2x2
jax: 0.10.0
libtpu: 0.0.40
codegen_flags: <defaults>
</compile_context>

<pallas_src>
import functools
import math

import jax
import jax.numpy as jnp
from jax.experimental import pallas as pl
from jax.experimental.pallas import tpu as pltpu


def _round_up(a: int, b: int) -> int:
    return ((a + b - 1) // b) * b


def _invariant_spec(block_shape, index_map):
    """BlockSpec for grid-invariant operands.

    Requests single-buffering (pl.Buffered(1)) so the pipeline does not keep a
    useless second copy of a block whose index never changes (saves VMEM;
    matters most on v7x's 64 MiB VMEM and v5e's small default scoped VMEM).
    Falls back to a plain BlockSpec if pipeline_mode is unavailable.
    """
    buffered = getattr(pl, "Buffered", None)
    if buffered is not None:
        try:
            return pl.BlockSpec(block_shape, index_map, pipeline_mode=buffered(1))
        except TypeError:
            pass
    return pl.BlockSpec(block_shape, index_map)


def _attention_kernel(x_ref, w_ref, b_ref, o_ref, qkv_ref, *, h_pad, s_real, tq):
    # Blocks:
    #   x_ref   : (1, Sp, F)   bf16  full (padded) sequence of x for this batch
    #   w_ref   : (F, 3*Hp)    bf16  fused [Wq*scale | Wk | Wv], zero-padded in H
    #   b_ref   : (1, 3*Hp)    f32   fused [bq*scale | bk | bv], zero-padded in H
    #   o_ref   : (1, TQ, Hp)  f32
    #   qkv_ref : (Sp, 3*Hp)   bf16  VMEM scratch: cached QKV projection
    f32 = jnp.float32
    bf16 = jnp.bfloat16
    qi = pl.program_id(1)

    # Fused QKV projection for the whole (padded) sequence, computed ONCE per
    # batch element (qi == 0) and cached in VMEM for all query tiles.  Single
    # wide matmul: (Sp, F) @ (F, 3*Hp) keeps MXU columns full (N >= 384).
    @pl.when(qi == 0)
    def _():
        xs = x_ref[0]                                                  # (Sp, F) bf16
        qkv = jnp.dot(xs, w_ref[...], preferred_element_type=f32) + b_ref[...]
        qkv_ref[...] = qkv.astype(bf16)                                # (Sp, 3*Hp)

    # Slice this step's query tile (scale already folded into Wq/bq) and the
    # full-sequence K / V out of the cached projection.
    row0 = pl.multiple_of(qi * tq, tq)
    q = qkv_ref[pl.ds(row0, tq), 0:h_pad]                              # (TQ, Hp) bf16
    k = qkv_ref[:, h_pad:2 * h_pad]                                    # (Sp, Hp) bf16
    v = qkv_ref[:, 2 * h_pad:3 * h_pad]                                # (Sp, Hp) bf16

    # scores = q @ k^T, contracting last dims directly (no XLU transpose of K).
    scores = jax.lax.dot_general(
        q, k, (((1,), (1,)), ((), ())), preferred_element_type=f32
    )                                                                  # (TQ, Sp)

    # Mask padded key positions (static no-op when Sp == S; padded keys are not
    # data-dependent, so denom is always > 0).
    s_pad = scores.shape[-1]
    if s_pad != s_real:
        key_idx = jax.lax.broadcasted_iota(jnp.int32, scores.shape, 1)
        scores = jnp.where(key_idx < s_real, scores, jnp.float32(-1e30))

    # Numerically stable softmax in f32.
    # TODO(synk): for long sequences (S_pad >~ 1-2K on v6e, earlier on v7x)
    # switch the Sp axis to a flash-style online-softmax KV loop so live state
    # is O(TQ*TK) instead of materializing the full (TQ, Sp) score matrix.
    m = jnp.max(scores, axis=-1, keepdims=True)
    e = jnp.exp(scores - m)
    denom = jnp.sum(e, axis=-1, keepdims=True)
    # approx reciprocal runs on the EUP slot (~1e-3 rel error); rows therefore
    # do not sum to exactly 1 — acceptable for inference at this tolerance.
    p = e * pl.reciprocal(denom, approx=True)                          # (TQ, Sp)

    out = jnp.dot(p.astype(bf16), v, preferred_element_type=f32)       # (TQ, Hp)
    o_ref[0] = out.astype(o_ref.dtype)


def attention_pallas(x, wq, wk, wv, bq, bk, bv):
    """x: (B, S, F) f32. wq/wk/wv: (F, H) f32 (transposed from PyTorch (H, F)).
    bq/bk/bv: (H,) f32. Returns (B, S, H) f32."""
    B, S, F = x.shape
    H = wq.shape[1]

    # Pad hidden dim to a lane-dense multiple of 128.
    Hp = _round_up(H, 128)

    # Query-tile size: 256 matches the v6e/v7x 256-wide MXU M dimension.
    # TODO(synk): per-generation tuning — prefer TQ=128 on v5e (4x128 MXU).
    TQ = min(256, _round_up(S, 8))
    S_pad = _round_up(S, TQ)
    n_q = S_pad // TQ

    scale = 1.0 / math.sqrt(float(H))

    def _pad_w(w):
        return jnp.pad(w, ((0, 0), (0, Hp - H)))

    def _pad_b(bvec):
        return jnp.pad(bvec, (0, Hp - H))

    # Fuse + zero-pad weights/biases; fold 1/sqrt(H) into the Q projection.
    # Padded H columns are zero, so padded q/k/v columns are exactly zero and
    # do not perturb QK^T or P@V.
    w_qkv = jnp.concatenate([_pad_w(wq) * scale, _pad_w(wk), _pad_w(wv)], axis=1)
    b_qkv = jnp.concatenate(
        [_pad_b(bq) * scale, _pad_b(bk), _pad_b(bv)]
    ).reshape(1, 3 * Hp).astype(jnp.float32)

    # Pre-cast the two large operands to bf16 (halves DMA bytes and VMEM
    # residency); biases and softmax math stay f32, matmuls accumulate in f32.
    x_p = jnp.pad(x, ((0, 0), (0, S_pad - S), (0, 0))).astype(jnp.bfloat16)
    w_qkv = w_qkv.astype(jnp.bfloat16)

    # Explicit VMEM budget sized from the actual buffers (2x slack), clamped to
    # a conservative ceiling.  TODO(synk): per-generation cap (<= ~56 MiB on
    # v7x, <= ~100 MiB on v5e/v6e) once chip detection is plumbed through.
    vmem_bytes = (
        2 * (S_pad * F * 2)          # x block (bf16), double-buffered
        + (F * 3 * Hp * 2)           # fused W (bf16), single-buffered
        + (3 * Hp * 4)               # fused bias (f32)
        + (S_pad * 3 * Hp * 2)       # QKV scratch (bf16)
        + 2 * (TQ * Hp * 4)          # output block (f32), double-buffered
        + 4 * (TQ * S_pad * 4)       # scores/e/p f32 intermediates + slack
    )
    vmem_limit = int(min(max(2 * vmem_bytes, 16 << 20), 100 << 20))

    kernel = functools.partial(_attention_kernel, h_pad=Hp, s_real=S, tq=TQ)

    out_padded = pl.pallas_call(
        kernel,
        out_shape=jax.ShapeDtypeStruct((B, S_pad, Hp), jnp.float32),
        grid_spec=pltpu.PrefetchScalarGridSpec(
            num_scalar_prefetch=0,
            grid=(B, n_q),
            in_specs=[
                # full (padded) sequence of x for this batch element
                pl.BlockSpec((1, S_pad, F), lambda b, qi: (b, 0, 0)),
                # fused weights / bias: grid-invariant -> single-buffered
                _invariant_spec((F, 3 * Hp), lambda b, qi: (0, 0)),
                _invariant_spec((1, 3 * Hp), lambda b, qi: (0, 0)),
            ],
            out_specs=pl.BlockSpec((1, TQ, Hp), lambda b, qi: (b, qi, 0)),
            scratch_shapes=[pltpu.VMEM((S_pad, 3 * Hp), jnp.bfloat16)],
        ),
        compiler_params=pltpu.CompilerParams(
            # qi carries the K/V-cache dependency (computed at qi==0) -> arbitrary;
            # b is independent -> parallel (megacore sharding across batches).
            dimension_semantics=("parallel", "arbitrary"),
            vmem_limit_bytes=vmem_limit,
        ),
    )(x_p, w_qkv, b_qkv)

    return out_padded[:, :S, :H]


def attention_ref(x, wq, wk, wv, bq, bk, bv):
    q = jnp.einsum("bsf,fh->bsh", x, wq) + bq
    k = jnp.einsum("bsf,fh->bsh", x, wk) + bk
    v = jnp.einsum("bsf,fh->bsh", x, wv) + bv
    scores = jnp.einsum("bqh,bkh->bqk", q, k) / jnp.sqrt(jnp.float32(q.shape[-1]))
    w = jax.nn.softmax(scores, axis=-1)
    return jnp.einsum("bqk,bkh->bqh", w, v)


if __name__ == "__main__":
    # Small shapes consistent with the module's forward: (batch, seq, in_features)
    B, S, F, H = 2, 8, 32, 32

    key = jax.random.PRNGKey(0)
    kx, kq, kk, kv_key, kbq, kbk, kbv = jax.random.split(key, 7)

    x = jax.random.normal(kx, (B, S, F), dtype=jnp.float32)

    # Deterministic "Linear" params, mimicking PyTorch's uniform(-1/sqrt(F), 1/sqrt(F)).
    bound = 1.0 / jnp.sqrt(jnp.float32(F))
    # PyTorch stores W as (H, F); we keep the transposed (F, H) layout for the kernel.
    wq = jax.random.uniform(kq, (F, H), jnp.float32, -bound, bound)
    wk = jax.random.uniform(kk, (F, H), jnp.float32, -bound, bound)
    wv = jax.random.uniform(kv_key, (F, H), jnp.float32, -bound, bound)
    bq = jax.random.uniform(kbq, (H,), jnp.float32, -bound, bound)
    bk = jax.random.uniform(kbk, (H,), jnp.float32, -bound, bound)
    bv = jax.random.uniform(kbv, (H,), jnp.float32, -bound, bound)

    out = attention_pallas(x, wq, wk, wv, bq, bk, bv)
    out = jax.block_until_ready(out)

    ref = attention_ref(x, wq, wk, wv, bq, bk, bv)
    assert out.shape == (B, S, H)
    # bf16 MXU inputs with f32 accumulation + approx-reciprocal softmax ->
    # compare with a mixed-precision-appropriate tolerance.
    assert jnp.allclose(out, ref, atol=3e-2, rtol=3e-2), "mismatch vs JAX reference"

    print("KERNEL_OK")
</pallas_src>

<mosaic_0001>
module attributes {stable_mosaic.version = 11 : i64} {
  func.func @_attention_kernel(%arg0: i32, %arg1: i32, %arg2: memref<1x8x32xbf16, #tpu.memory_space<vmem>>, %arg3: memref<32x384xbf16, #tpu.memory_space<vmem>>, %arg4: memref<1x384xf32, #tpu.memory_space<vmem>>, %arg5: memref<1x8x128xf32, #tpu.memory_space<vmem>>, %arg6: memref<8x384xbf16, #tpu.memory_space<vmem>>) attributes {dimension_semantics = [#tpu.dimension_semantics<parallel>, #tpu.dimension_semantics<arbitrary>], iteration_bounds = array<i64: 2, 1>, scalar_prefetch = 0 : i64, scratch_operands = 1 : i64, tpu.core_type = #tpu.core_type<tc>, window_params = [{transform_indices = @transform_0, window_bounds = array<i64: 1, 8, 32>}, {pipeline_mode = #tpu.pipeline_mode<synchronous>, transform_indices = @transform_1, window_bounds = array<i64: 32, 384>}, {pipeline_mode = #tpu.pipeline_mode<synchronous>, transform_indices = @transform_2, window_bounds = array<i64: 1, 384>}, {transform_indices = @transform_3, window_bounds = array<i64: 1, 8, 128>}]} {
    %c0_i32 = arith.constant 0 : i32
    %0 = arith.cmpi eq, %arg1, %c0_i32 : i32
    %1 = arith.extui %0 : i1 to i32
    %c0_i32_0 = arith.constant 0 : i32
    %2 = arith.cmpi ne, %1, %c0_i32_0 : i32
    scf.if %2 {
      %c0_9 = arith.constant 0 : index
      %c0_10 = arith.constant 0 : index
      %c0_11 = arith.constant 0 : index
      %25 = vector.load %arg2[%c0_9, %c0_10, %c0_11] : memref<1x8x32xbf16, #tpu.memory_space<vmem>>, vector<1x8x32xbf16>
      %26 = vector.shape_cast %25 : vector<1x8x32xbf16> to vector<8x32xbf16>
      %c0_12 = arith.constant 0 : index
      %c0_13 = arith.constant 0 : index
      %27 = vector.load %arg3[%c0_12, %c0_13] : memref<32x384xbf16, #tpu.memory_space<vmem>>, vector<32x384xbf16>
      %cst_14 = arith.constant dense<0.000000e+00> : vector<8x384xf32>
      %28 = tpu.matmul %26, %27, %cst_14 {dimension_numbers = #tpu.dot_dimension_numbers<[1], [0], [0], [1], [0, 0, 1, 1], [], []>} : vector<8x32xbf16>, vector<32x384xbf16>, vector<8x384xf32> -> vector<8x384xf32>
      %c0_15 = arith.constant 0 : index
      %c0_16 = arith.constant 0 : index
      %29 = vector.load %arg4[%c0_15, %c0_16] : memref<1x384xf32, #tpu.memory_space<vmem>>, vector<1x384xf32>
      %30 = vector.broadcast %29 : vector<1x384xf32> to vector<8x384xf32>
      %31 = arith.addf %28, %30 : vector<8x384xf32>
      %32 = arith.truncf %31 : vector<8x384xf32> to vector<8x384xbf16>
      %c0_17 = arith.constant 0 : index
      %c0_18 = arith.constant 0 : index
      %33 = vector.load %arg6[%c0_17, %c0_18] : memref<8x384xbf16, #tpu.memory_space<vmem>>, vector<8x384xbf16>
      tpu.vector_store %arg6[%c0_17, %c0_18], %32 {strides = array<i32>} : memref<8x384xbf16, #tpu.memory_space<vmem>>, vector<8x384xbf16>,
    } else {
    }
    %c8_i32 = arith.constant 8 : i32
    %3 = arith.muli %arg1, %c8_i32 : i32
    %4 = tpu.assume_multiple %3, 8 : i32
    %5 = arith.index_cast %4 : i32 to index
    %c0 = arith.constant 0 : index
    %6 = vector.load %arg6[%5, %c0] : memref<8x384xbf16, #tpu.memory_space<vmem>>, vector<8x128xbf16>
    %c0_1 = arith.constant 0 : index
    %c128 = arith.constant 128 : index
    %7 = vector.load %arg6[%c0_1, %c128] : memref<8x384xbf16, #tpu.memory_space<vmem>>, vector<8x128xbf16>
    %c0_2 = arith.constant 0 : index
    %c256 = arith.constant 256 : index
    %8 = vector.load %arg6[%c0_2, %c256] : memref<8x384xbf16, #tpu.memory_space<vmem>>, vector<8x128xbf16>
    %cst = arith.constant dense<0.000000e+00> : vector<8x8xf32>
    %9 = tpu.matmul %6, %7, %cst {dimension_numbers = #tpu.dot_dimension_numbers<[1], [1], [0], [0], [0, 0, 1, 0], [], []>} : vector<8x128xbf16>, vector<8x128xbf16>, vector<8x8xf32> -> vector<8x8xf32>
    %cst_3 = arith.constant dense<0xFF800000> : vector<8xf32>
    %10 = vector.multi_reduction <maximumf>, %9, %cst_3 [1] : vector<8x8xf32> to vector<8xf32>
    %11 = vector.shape_cast %10 : vector<8xf32> to vector<8x1xf32>
    %12 = vector.broadcast %11 : vector<8x1xf32> to vector<8x8xf32>
    %13 = arith.subf %9, %12 : vector<8x8xf32>
    %14 = math.exp %13 : vector<8x8xf32>
    %cst_4 = arith.constant dense<0.000000e+00> : vector<8xf32>
    %15 = vector.multi_reduction <add>, %14, %cst_4 [1] : vector<8x8xf32> to vector<8xf32>
    %16 = vector.shape_cast %15 : vector<8xf32> to vector<8x1xf32>
    %17 = tpu.reciprocal %16 {approx = true} : vector<8x1xf32> -> vector<8x1xf32>
    %18 = vector.broadcast %17 : vector<8x1xf32> to vector<8x8xf32>
    %19 = arith.mulf %14, %18 : vector<8x8xf32>
    %20 = arith.truncf %19 : vector<8x8xf32> to vector<8x8xbf16>
    %cst_5 = arith.constant dense<0.000000e+00> : vector<8x128xf32>
    %21 = tpu.matmul %20, %8, %cst_5 {dimension_numbers = #tpu.dot_dimension_numbers<[1], [0], [0], [1], [0, 0, 1, 1], [], []>} : vector<8x8xbf16>, vector<8x128xbf16>, vector<8x128xf32> -> vector<8x128xf32>
    %c0_6 = arith.constant 0 : index
    %c0_7 = arith.constant 0 : index
    %c0_8 = arith.constant 0 : index
    %22 = vector.load %arg5[%c0_6, %c0_7, %c0_8] : memref<1x8x128xf32, #tpu.memory_space<vmem>>, vector<1x8x128xf32>
    %23 = vector.shape_cast %22 : vector<1x8x128xf32> to vector<8x128xf32>
    %24 = vector.shape_cast %21 : vector<8x128xf32> to vector<1x8x128xf32>
    tpu.vector_store %arg5[%c0_6, %c0_7, %c0_8], %24 {strides = array<i32>} : memref<1x8x128xf32, #tpu.memory_space<vmem>>, vector<1x8x128xf32>,
    return
  }
  func.func @transform_0(%arg0: i32, %arg1: i32) -> (i32, i32, i32) {
    %c0_i32 = arith.constant 0 : i32
    %c0_i32_0 = arith.constant 0 : i32
    %c0_i32_1 = arith.constant 0 : i32
    return %arg0, %c0_i32, %c0_i32_0 : i32, i32, i32
  }
  func.func @transform_1(%arg0: i32, %arg1: i32) -> (i32, i32) {
    %c0_i32 = arith.constant 0 : i32
    %c0_i32_0 = arith.constant 0 : i32
    %c0_i32_1 = arith.constant 0 : i32
    return %c0_i32, %c0_i32_0 : i32, i32
  }
  func.func @transform_2(%arg0: i32, %arg1: i32) -> (i32, i32) {
    %c0_i32 = arith.constant 0 : i32
    %c0_i32_0 = arith.constant 0 : i32
    %c0_i32_1 = arith.constant 0 : i32
    return %c0_i32, %c0_i32_0 : i32, i32
  }
  func.func @transform_3(%arg0: i32, %arg1: i32) -> (i32, i32, i32) {
    %c0_i32 = arith.constant 0 : i32
    %c0_i32_0 = arith.constant 0 : i32
    return %arg0, %arg1, %c0_i32 : i32, i32, i32
  }
}

</mosaic_0001>

<bundles_post_ra>
// kernel: tpu_custom_call.1
= control target key start
LH: loop header
LB: loop body
LE: loop exit
PB: predicated region body
PF: predicated region fallthrough
CT: control target
= control target key end

     0   :  { %8 = vsyncpa [#allocation4], 0  ;;  %s1000_s0 = inlined_call_operand.hbm [shape: bf16[2,8,32], index: 0, kind: input, shape index: {}]   ;;  %s1001_s1 = inlined_call_operand.hbm [shape: bf16[32,384], index: 1, kind: input, shape index: {}]   ;;  %s1002_s2 = inlined_call_operand.hbm [shape: f32[1,384], index: 2, kind: input, shape index: {}]   ;;  %s1003_s3 = inlined_call_operand.hbm [shape: f32[2,8,128], index: 3, kind: output, shape index: {}]  }
   0x1   :  { %10 = vsyncpa [#allocation4 + $0x1], 0 }
   0x2   :  { %11 = vsyncpa [#allocation7], 0 }
   0x3   :  { %12 = vsyncpa [#allocation5], 0 }
   0x4   :  { %14 = vsyncpa [#allocation5 + $0x1], 0  ;;  %s849_s12 = smov 0   ;;  %s851_s13 = smov 0  }
   0x5   :  { %s853_s14 = smov 0   ;;  %s855_s15 = smov 0  }
   0x6   :  { %s857_s16 = smov 0   ;;  %s859_s17 = smov 0  }
   0x7 LB: > { %s507_s18 = sadd.s32 4294967295, %s823_s17   ;;  %p509_p0 = scmp.ge.s32.totalorder %s823_s17, 1  ;;  %s823_s17 = sphi %s859_s17, %s20_s17   ;;  %s819_s16 = sphi %s857_s16, %s1013_s16   ;;  %s815_s15 = sphi %s855_s15, %s1012_s15   ;;  %s811_s14 = sphi %s853_s14, %s1011_s14   ;;  %s807_s13 = sphi %s851_s13, %s1010_s13   ;;  %s803_s12 = sphi %s849_s12, %s1009_s12  }
   0x8   : > { %p883_p1 = scmp.eq.s32.totalorder %s507_s18, 0  ;;  %p133_p2 = scmp.lt.s32.totalorder %s823_s17, 3 }
   0x9   : > { %s144_s22 = sshll.u32 %s1001_s1, 4  ;;  %s825_s24 = smov [#allocation6]   ;;  %s145_s22 = int_to_ptr.hbm [resolvable:$true] %s144_s22 }
   0xa   : > { %p891_p3 = pnand %p509_p0, %p133_p2  ;;  %s146_s25 = sshll.u32 %s825_s24, 4  ;;  %s147_s25 = int_to_ptr.vmem [resolvable:$true] %s146_s25 }
   0xb   : > { %p512_p6 = scmp.ge.s32.totalorder %s823_s17, 2  ;;  %s159_s28 = sshll.u32 %s1002_s2, 4  ;;  %s160_s28 = int_to_ptr.hbm [resolvable:$true] %s159_s28 }
   0xc   : > { %p570_p4 = pneg %p891_p3  ;;  %s826_s29 = smov 192  }
   0xd   : > { %s827_s30 = smov 12   ;;  %s828_s4 = smov [#allocation8]  }
   0xe   : > { %p571_p5 = pnand %p570_p4, %p883_p1  ;;  %s161_s5 = sshll.u32 %s828_s4, 4  ;;  %s162_s5 = int_to_ptr.vmem [resolvable:$true] %s161_s5 }
   0xf   : > { %s32_s6 = sadd.s32 1, %s819_s16  ;;  %s508_s7 = sadd.s32 4294967294, %s823_s17  }
  0x10   : > { %573 = dma.hbm_to_vmem [thread:$0]  (!%p571_p5), %s145_s22, 768, %s147_s25, [#allocation7], %s826_s29, %s826_s29, %s827_s30  }
  0x11   : > { %576 = dma.hbm_to_vmem [thread:$0]  (!%p571_p5), %s160_s28, 48, %s162_s5, [#allocation7]  }
  0x12   : > { %p34_p7 = scmp.ge.s32.totalorder %s32_s6, 2  ;;  %s39_s8 = sadd.s32 1, %s811_s14 }
  0x13   : > { %p46_p8 = scmp.ne.s32.totalorder %s811_s14, %s807_s13  ;;  %p47_p9 = scmp.eq.s32.totalorder %s823_s17, 0 }
  0x14   : > { %s1015_s6 = smov (%p34_p7, %s32_s6), 0  ;;  %p52_p10 = scmp.ne.s32.totalorder %s807_s13, %s803_s12 }
  0x15   : > { %s36_s9 = ssub.s32 %s819_s16, %s1015_s6  ;;  %p120_p11 = scmp.eq.s32.totalorder %s507_s18, 1 }
  0x16   : > { %p37_p12 = scmp.eq.s32.totalorder %s36_s9, 0  ;;  %p919_p13 = por %p883_p1, %p52_p10 }
  0x17   : > { %p923_p0 = por %p120_p11, %p46_p8  ;;  %p126_p2 = scmp.eq.s32.totalorder %s508_s7, 1 }
  0x18   : > { %s928_s20 = scalar_select %p37_p12, %s811_s14, %s39_s8  }
  0x19   : > { %p48_p4 = por %p47_p9, %p46_p8  ;;  %p930_p5 = por %p126_p2, %p52_p10 }
  0x1a   : > { %s172_s22 = sand.u32 1, %s811_s14   ;;  %s514_s18 = sshll.u32 %s819_s16, 2 }
  0x1b   : > { %p587_p7 = scmp.lt.s32.totalorder %s823_s17, 2  ;;  %s513_s24 = sshll.u32 %s172_s22, 2 }
  0x1c   : > { %s180_s27 = scalar_lea.hbm %s1000_s0, %s514_s18  ;;  %s176_s29 = scalar_lea.vmem [#allocation3], %s513_s24 }
  0x1d   : > { %s182_s28 = sshll.u32 %s180_s27, 4  ;;  %s184_s30 = sshll.u32 %s176_s29, 4  ;;  %s183_s28 = int_to_ptr.hbm [resolvable:$true] %s182_s28  ;;  %s185_s30 = int_to_ptr.vmem [resolvable:$true] %s184_s30 }
  0x1e   : > { %p578_p11 = pnand %p587_p7, %p48_p4  ;;  %s173_s4 = scalar_lea.sflag [#allocation4], %s172_s22 }
  0x1f   : > { %193 = sbr.rel (%p891_p3) target bundleno = 717 (0x2cd), region = 32  ;;  %s943_s5 = sand.u32 (!%p891_p3), 1, %s807_s13  }
  0x20   : > { %580 = dma.hbm_to_vmem [thread:$0]  (!%p578_p11), %s183_s28, 64, %s185_s30, %s173_s4  }
  0x21   : > { %s516_s7 = sshll.u32 (!%p891_p3), %s943_s5, 2  ;;  %s196_s8 = scalar_lea.sflag (!%p891_p3), [#allocation4], %s943_s5 }
  0x22   : > { %s199_s9 = scalar_lea.vmem (!%p891_p3), [#allocation3], %s516_s7 }
  0x24   : > { %790 = dma.done.wait (%p919_p13), %s196_s8, 64  }
  0x25   : > { %792 = vsyncadd (%p919_p13), %s196_s8, 4294967232 }
  0x26   : > { %794 = dma.done.wait (%p883_p1), [#allocation7], 816  }
  0x27   : > { %796 = vsyncadd (%p883_p1), [#allocation7], 4294966480  ;;  %v534_v0 = vld [vmem:[#allocation6 + $0x18] sm:$0xf]  ;;  %v556_v1 = vld [vmem:[#allocation6 + $0x20] sm:$0xf0] }
  0x28   : > { %v555_v2 = vld [vmem:[#allocation6 + $0x1c] sm:$0xf]  ;;  %v535_v3 = vor.u32 %v556_v1, %v534_v0  ;;  %v536_v4 = vld [vmem:[#allocation6 + $0x24] sm:$0xf0]  ;;  %v522_v5 = vld [vmem:[#allocation6] sm:$0xf] }
  0x29   : > { %v553_v6 = vld [vmem:[#allocation6 + $0x8] sm:$0xf0]  ;;  %v539_v7 = vor.u32 %v555_v2, %v536_v4  ;;  %v552_v8 = vld [vmem:[#allocation6 + $0x4] sm:$0xf]  ;;  %v524_v9 = vld [vmem:[#allocation6 + $0xc] sm:$0xf0] }
  0x2a   : > { %297 = vmatpush.bf16.msra.mxu0 %v535_v3  ;;  %v523_v10 = vor.u32 %v553_v6, %v522_v5  ;;  %v527_v11 = vor.u32 %v552_v8, %v524_v9  ;;  %v238_v12 = vld [vmem:[%s199_s9] sm:$0xf]  ;;  %vm287_vm0 = vcmask 261120   ;;  %v247_v13 = vld [vmem:[#allocation8] sm:$0x7]  ;;  %vm356_vm1 = vcmask 64512  }
  0x2b   : > { %310 = vmatpush.bf16.msra.mxu1 %v539_v7  ;;  %v249_v14 = vperm.slane %v247_v13, 0  ;;  %v250_v15 = vperm.slane %v247_v13, 1  ;;  %v542_v25 = vld [vmem:[#allocation6 + $0x20] sm:$0xf]  ;;  %v557_v26 = vld [vmem:[#allocation6 + $0x28] sm:$0xf0] }
  0x2c   : > { %v530_v27 = vld [vmem:[#allocation6 + $0x8] sm:$0xf]  ;;  %v543_v28 = vor.u32 %v557_v26, %v542_v25  ;;  %v554_v29 = vld [vmem:[#allocation6 + $0x10] sm:$0xf0]  ;;  %v251_v34 = vperm.slane %v247_v13, 2  ;;  %vm372_vm2 = vcmask 1043456  }
  0x2d   : > { %v531_v30 = vor.u32 %v554_v29, %v530_v27  ;;  %s549_s19 = sshll.u32 %s815_s15, 3  ;;  %s519_s23 = sshll.u32 %s943_s5, 3 }
  0x2e   : > { %298 = vmatpush.bf16.msra.mxu0 %v523_v10  ;;  %323 = vmatpush.bf16.msra.mxu2 %v543_v28  ;;  %s402_s18 = scalar_lea.hbm %s1003_s3, %s549_s19  ;;  %s232_s24 = scalar_lea.vmem [#allocation9], %s519_s23 }
  0x2f   : > { %311 = vmatpush.bf16.msra.mxu1 %v527_v11  ;;  %s404_s25 = sshll.u32 %s232_s24, 4  ;;  %s406_s26 = sshll.u32 %s402_s18, 4  ;;  %s405_s25 = int_to_ptr.vmem [resolvable:$true] %s404_s25  ;;  %s407_s26 = int_to_ptr.hbm [resolvable:$true] %s406_s26 }
  0x30   : > { %s391_s27 = scalar_lea.sflag [#allocation5], %s943_s5  ;;  %s751_s28 = sshra.s32 %s407_s26, 4  ;;  %s752_s28 = int_to_ptr.hbm [resolvable:$true] %s751_s28 }
  0x31   : > { %544 = vmatmul.msk.bf16.vlgmr.msra.gmra.mxu0 %vm287_vm0, %v238_v12  ;;  %s753_s29 = scalar_lea.hbm %s752_s28, 8  ;;  %s757_s4 = scalar_lea.hbm %s1003_s3, 16 }
  0x32   : > { %545 = vmatmul.msk.bf16.vlgmr.msra.gmra.mxu1 %vm287_vm0, %v238_v12  ;;  %324 = vmatpush.bf16.msra.mxu2 %v531_v30  ;;  %p754_p1 = scmp.ne.s32.totalorder %s752_s28, %s753_s29  ;;  %p758_p9 = scmp.lt.s32.totalorder %s752_s28, %s1003_s3 }
  0x33   : > { %p759_p10 = scmp.lt.s32.totalorder %s757_s4, %s753_s29 }
  0x34   : > { %p755_p3 = pnand %p754_p1, %p923_p0 }
  0x35   : > { %546 = vmatmul.msk.bf16.vlgmr.msra.gmra.mxu2 %vm287_vm0, %v238_v12  ;;  %p760_p12 = por %p759_p10, %p758_p9 }
  0x36   : > { %p756_p8 = pneg %p755_p3 }
  0x38   : > { %p761_p13 = pnand %p760_p12, %p756_p8 }
  0xae   : > { %v300_v16 = vpop.f32.mrf.mxu0 }
  0xaf   : > { %v301_v17 = vadd.f32 %v300_v16, %v249_v14  ;;  %v313_v18 = vpop.f32.mrf.mxu1 }
  0xb0   : > { %v314_v19 = vadd.f32 %v313_v18, %v250_v15 }
  0xb2   : > { %v330_v20 = vpack.c.bf16 %v314_v19, %v301_v17 }
  0xb4   : > { %332 = vst [vmem:[#allocation2] sm:$0xff] %v330_v20 }
  0xb6   : > { %v302_v21 = vpop.f32.mrf.mxu0 }
  0xb7   : > { %v315_v22 = vpop.f32.mrf.mxu1 }
  0xb8   : > { %v326_v36 = vpop.f32.mrf.mxu2 }
  0xb9   : > { %v327_v38 = vadd.f32 %v326_v36, %v251_v34 }
  0xbb   : > { %v341_v23 = vld [vmem:[#allocation2 + $0x4] sm:$0xf]  ;;  %v340_v24 = vld [vmem:[#allocation2] sm:$0xf]  ;;  %v331_v40 = vpack.c.bf16 %v327_v38, %v327_v38 }
  0xbc   : > { %350 = vmatpush.bf16.xpose.msra.mxu3 %v341_v23 }
  0xbd   : > { %333 = vst [vmem:[#allocation2 + $0x8] sm:$0xf] %v331_v40 }
  0xc0   : > { %v328_v41 = vpop.f32.mrf.mxu2 }
  0xc3   : > { %351 = vmatmul.bf16.vlgmr.msra.gmra.mxu3 %v340_v24 }
  0xc4   : > { %v342_v44 = vld [vmem:[#allocation2 + $0x8] sm:$0xf] }
  0xc5   : > { %v374_v45 = vsel %vm372_vm2, %v342_v44, 0 }
  0xc6   : > { %383 = vmatpush.bf16.msrb.mxu0 %v374_v45 }
 0x146   : > { %v352_v31 = vpop.f32.mrf.mxu3 }
 0x147   : > { %v357_v32 = vsel %vm356_vm1, %v352_v31, -inf }
 0x148   : > { %358 = vmax.xlane.f32.xlu0 %v357_v32 }
 0x14e   : > { %v354_v33 = vpop.f32.mrf.mxu3 }
 0x1bb   : > { %v359_v35 = vpop.xlane.xlu0 %358 }
 0x1bc   : > { %v360_v37 = vsub.f32 %v352_v31, %v359_v35 }
 0x1be   : > { %v361_v39 = vmul.f32 1.442695, %v360_v37 }
 0x1c0   : > { %643 = vpow2.f32 %v361_v39 }
 0x1c6   : > { %v644_v42 = vpop.eup %643 }
 0x1c7   : > { %v363_v43 = vsel %vm356_vm1, %v644_v42, 0.0 }
 0x1c8   : > { %364 = vadd.xlane.f32.xlu0 %v363_v43 }
 0x23b   : > { %v365_v46 = vpop.xlane.xlu0 %364 }
 0x23c   : > { %645 = vrcp.f32 %v365_v46 }
 0x242   : > { %v646_v47 = vpop.eup %645 }
 0x243   : > { %v367_v48 = vmul.f32 %v646_v47, %v644_v42 }
 0x245   : > { %v368_v49 = vpack.c.bf16 %v367_v48, %v367_v48 }
 0x247   : > { %547 = vmatmul.msk.bf16.vlgmr.msrb.gmra.mxu0 %vm356_vm1, %v368_v49 }
 0x2c4   : > { %v385_v50 = vpop.f32.mrf.mxu0 }
 0x2c5   : > { %389 = vst [vmem:[%s232_s24] sm:$0xff] %v385_v50 }
 0x2c6   : > { %764 = shalt.err (!%p761_p13)
}
 0x2c7   : > { %568 = dma.vmem_to_hbm [thread:$0]  (%p923_p0), %s405_s25, 128, %s407_s26, %s391_s27  }
 0x2cc   : > { %v387_v51 = vpop.f32.mrf.mxu0 }
 0x2cd PF: > { %s418_s5 = sand.u32 1, %s803_s12   ;;  %p582_p2 = pnand %p512_p6, %p930_p5 }
 0x2ce   : > { %s419_s9 = scalar_lea.sflag [#allocation5], %s418_s5 }
 0x2cf   : > { %p583_p4 = pneg %p582_p2 }
 0x2d1   : > { %798 = dma.done.wait (%p583_p4), %s419_s9, 128  }
 0x2d2   : > { %800 = vsyncadd (%p583_p4), %s419_s9, 4294967168  ;;  %s20_s17 = sadd.s32 1, %s823_s17   ;;  %s1009_s12 = smov %s807_s13 }
 0x2d3   : > { %p17_p7 = scmp.ge.s32.totalorder %s20_s17, 4   ;;  %s1010_s13 = smov %s811_s14 }
 0x2d4   : > { %s1011_s14 = smov %s928_s20  ;;  %s1012_s15 = smov %s819_s16 }
 0x2d5   : > { %s1013_s16 = smov %s1015_s6  ;;  %19 = sbr.rel (!%p17_p7) target bundleno = 7 (0x7), region = 90 }
 0x2da   :  { %425 = vsyncpa [#allocation4], 1 }
 0x2db   :  { %427 = vsyncpa [#allocation4 + $0x1], 1 }
 0x2dc   :  { %428 = vsyncpa [#allocation7], 1 }
 0x2dd   :  { %429 = vsyncpa [#allocation5], 1 }
 0x2de   :  { %431 = vsyncpa [#allocation5 + $0x1], 1 }

</bundles_post_ra>
